<compile_context>
chip_gen: v7x
topology: tpu7x:2x2x1
jax: 0.10.0
libtpu: 0.0.40
codegen_flags: <defaults>
</compile_context>

<pallas_src>
import functools

import jax
import jax.numpy as jnp
from jax.experimental import pallas as pl
from jax.experimental.pallas import tpu as pltpu


def _round_up(n, m):
    return ((n + m - 1) // m) * m


def _cdiv(a, b):
    return -(-a // b)


def _pad_to(a, shape):
    pads = [(0, s - d) for d, s in zip(a.shape, shape)]
    return jnp.pad(a, pads)


def _vmem_capacity_bytes():
    try:
        return int(pltpu.get_tpu_info().vmem_capacity_bytes)
    except Exception:
        return 64 << 20  # conservative (v7x per-TC)


# --------------------------------------------------------------------------
# One-time parameter preparation (hoisted out of the per-call path).
# --------------------------------------------------------------------------
def prepare_ass_params(params, *, dtype=jnp.float32):
    """Fuse W1|W2|Wf1 into one lane-dense matrix, fold the 2-way softmax into
    a sigmoid gate, and decide resident vs K-tiled execution.  Call once."""
    (w1, b1, w2, b2, wf1, bf1, wf2, bf2) = params
    c_in, c_out = w1.shape
    hidden = wf1.shape[1]

    c_out_p = _round_up(c_out, 128)
    h_p = _round_up(hidden, 128)
    nf = 2 * c_out_p + h_p

    vmem_budget = int(0.75 * _vmem_capacity_bytes())  # ~48 MiB v7x, ~96 MiB v5e/v6e
    itemsize = jnp.dtype(dtype).itemsize

    # Fall back to K-tiling when the fused weight cannot comfortably stay
    # VMEM-resident (leave room for activations / double-buffering headroom).
    use_k_tiling = (c_in * nf * itemsize) > (vmem_budget // 2)
    tk = 512 if use_k_tiling else None            # multiple of 256 (v6e/v7x MXU depth)
    c_in_p = _round_up(c_in, tk) if use_k_tiling else c_in

    w_fused = jnp.concatenate([
        _pad_to(w1, (c_in_p, c_out_p)),
        _pad_to(w2, (c_in_p, c_out_p)),
        _pad_to(wf1, (c_in_p, h_p)),
    ], axis=1).astype(dtype)
    b_fused = jnp.concatenate([
        _pad_to(b1, (1, c_out_p)),
        _pad_to(b2, (1, c_out_p)),
        _pad_to(bf1, (1, h_p)),
    ], axis=1).astype(jnp.float32)
    # softmax([l0, l1])[0] == sigmoid(l0 - l1)  ->  one gate row + scalar bias.
    wg = _pad_to((wf2[:, 0:1] - wf2[:, 1:2]).T, (1, h_p)).astype(jnp.float32)
    bg = (bf2[:, 0:1] - bf2[:, 1:2]).reshape(1, 1).astype(jnp.float32)

    return dict(
        w_fused=w_fused, b_fused=b_fused, wg=wg, bg=bg,
        c_in=c_in, c_in_p=c_in_p, c_out=c_out, c_out_p=c_out_p,
        h_p=h_p, nf=nf, use_k_tiling=use_k_tiling, tk=tk,
        vmem_budget=vmem_budget, dtype=dtype)


# --------------------------------------------------------------------------
# Kernels
# --------------------------------------------------------------------------
def ass_kernel_resident(x_ref, w_ref, b_ref, wg_ref, bg_ref, o_ref, *,
                        c_out_p, h_p):
    # One fused MXU matmul: columns = [out1 | out2 | gate-hidden]
    fused = jnp.dot(x_ref[...], w_ref[...],
                    preferred_element_type=jnp.float32) + b_ref[...]

    # Gate: relu -> weighted XLU sum -> EUP sigmoid (softmax over 2 classes).
    h = jnp.maximum(fused[:, 2 * c_out_p:2 * c_out_p + h_p], 0.0)
    logit = jnp.sum(h * wg_ref[...], axis=-1, keepdims=True) + bg_ref[0, 0]
    g0 = jax.nn.sigmoid(logit)                       # (TB, 1)

    out1 = fused[:, :c_out_p]
    out2 = fused[:, c_out_p:2 * c_out_p]
    o_ref[...] = (out2 + g0 * (out1 - out2)).astype(o_ref.dtype)


def ass_kernel_ktiled(x_ref, w_ref, b_ref, wg_ref, bg_ref, o_ref, acc_ref, *,
                      c_out_p, h_p):
    k = pl.program_id(1)

    @pl.when(k == 0)
    def _():
        acc_ref[...] = jnp.zeros_like(acc_ref)

    acc_ref[...] += jnp.dot(x_ref[...], w_ref[...],
                            preferred_element_type=jnp.float32)

    @pl.when(k == pl.num_programs(1) - 1)
    def _():
        fused = acc_ref[...] + b_ref[...]
        h = jnp.maximum(fused[:, 2 * c_out_p:2 * c_out_p + h_p], 0.0)
        logit = jnp.sum(h * wg_ref[...], axis=-1, keepdims=True) + bg_ref[0, 0]
        g0 = jax.nn.sigmoid(logit)
        out1 = fused[:, :c_out_p]
        out2 = fused[:, c_out_p:2 * c_out_p]
        o_ref[...] = (out2 + g0 * (out1 - out2)).astype(o_ref.dtype)


# --------------------------------------------------------------------------
# Wrapper
# --------------------------------------------------------------------------
def ass_forward(x, prepped, *, tb=512):
    c_in = prepped["c_in"]
    c_in_p = prepped["c_in_p"]
    c_out = prepped["c_out"]
    c_out_p = prepped["c_out_p"]
    h_p = prepped["h_p"]
    nf = prepped["nf"]
    dtype = prepped["dtype"]
    itemsize = jnp.dtype(dtype).itemsize
    B = x.shape[0]

    use_k_tiling = prepped["use_k_tiling"]
    tb_eff = 256 if use_k_tiling else tb

    # Batch tile: minimize round-up waste; keep >=2 grid steps when possible so
    # dimension_semantics=("parallel",) shards across v7x's two TensorCores.
    n_steps = max(_cdiv(B, tb_eff), 2 if B > 8 else 1)
    TB = _round_up(_cdiv(B, n_steps), 8)
    b_p = _round_up(B, TB)

    x_c = x.astype(dtype)

    if not use_k_tiling:
        # Only pad the batch dim; the contraction dim stays at the natural
        # c_in (full-extent last block dim is allowed -> no extra HBM pass).
        x_p = _pad_to(x_c, (b_p, c_in)) if b_p != B else x_c

        vmem_bytes = (2 * c_in * nf * itemsize        # fused W (<= 2 buffers)
                      + 8 * (nf + h_p)                # biases / gate row
                      + 2 * TB * c_in * itemsize      # x tiles
                      + 2 * TB * c_out_p * 4          # out tiles
                      + 2 * TB * nf * 4               # fused intermediates
                      + (4 << 20))
        vmem_bytes = min(max(vmem_bytes, 16 << 20), prepped["vmem_budget"])

        kernel = functools.partial(ass_kernel_resident,
                                   c_out_p=c_out_p, h_p=h_p)

        def _call(single_buffer_weights):
            const = ({"pipeline_mode": pl.Buffered(1)}
                     if single_buffer_weights else {})
            return pl.pallas_call(
                kernel,
                out_shape=jax.ShapeDtypeStruct((b_p, c_out_p), x.dtype),
                grid=(b_p // TB,),
                in_specs=[
                    pl.BlockSpec((TB, c_in), lambda i: (i, 0)),          # x tile
                    pl.BlockSpec((c_in, nf), lambda i: (0, 0), **const),  # fused W
                    pl.BlockSpec((1, nf), lambda i: (0, 0), **const),     # fused bias
                    pl.BlockSpec((1, h_p), lambda i: (0, 0), **const),    # gate row
                    pl.BlockSpec(memory_space=pltpu.MemorySpace.SMEM),    # gate bias
                ],
                out_specs=pl.BlockSpec((TB, c_out_p), lambda i: (i, 0)),
                compiler_params=pltpu.CompilerParams(
                    dimension_semantics=("parallel",),
                    vmem_limit_bytes=int(vmem_bytes)),
            )(x_p, prepped["w_fused"], prepped["b_fused"],
              prepped["wg"], prepped["bg"])

        try:
            # Single-buffer the grid-invariant weights (halves their VMEM use).
            out_p = _call(True)
        except Exception:
            # This jax build rejects pipeline_mode -> default double-buffering.
            out_p = _call(False)
    else:
        # K-tiled fallback: fused weight streamed over the contraction dim.
        tk = prepped["tk"]
        x_p = _pad_to(x_c, (b_p, c_in_p))

        vmem_bytes = (2 * tk * nf * itemsize          # W K-tiles (double-buffered)
                      + 8 * (nf + h_p)
                      + 2 * TB * tk * itemsize        # x tiles
                      + 2 * TB * c_out_p * 4          # out tiles
                      + 3 * TB * nf * 4               # acc scratch + intermediates
                      + (4 << 20))
        vmem_bytes = min(max(vmem_bytes, 16 << 20), prepped["vmem_budget"])

        kernel = functools.partial(ass_kernel_ktiled, c_out_p=c_out_p, h_p=h_p)

        out_p = pl.pallas_call(
            kernel,
            out_shape=jax.ShapeDtypeStruct((b_p, c_out_p), x.dtype),
            grid=(b_p // TB, c_in_p // tk),
            in_specs=[
                pl.BlockSpec((TB, tk), lambda i, k: (i, k)),
                pl.BlockSpec((tk, nf), lambda i, k: (k, 0)),
                pl.BlockSpec((1, nf), lambda i, k: (0, 0)),
                pl.BlockSpec((1, h_p), lambda i, k: (0, 0)),
                pl.BlockSpec(memory_space=pltpu.MemorySpace.SMEM),
            ],
            out_specs=pl.BlockSpec((TB, c_out_p), lambda i, k: (i, 0)),
            scratch_shapes=[pltpu.VMEM((TB, nf), jnp.float32)],
            compiler_params=pltpu.CompilerParams(
                dimension_semantics=("parallel", "arbitrary"),
                vmem_limit_bytes=int(vmem_bytes)),
        )(x_p, prepped["w_fused"], prepped["b_fused"],
          prepped["wg"], prepped["bg"])

    return out_p[:B, :c_out]


# --------------------------------------------------------------------------
# Reference / test harness
# --------------------------------------------------------------------------
def init_params(key, inchannel, outchannel, hidden=64):
    """Deterministic synthetic parameters matching the PyTorch module
    (stored transposed: (in, out) instead of (out, in))."""
    ks = jax.random.split(key, 8)
    scale = 0.1
    w1 = scale * jax.random.normal(ks[0], (inchannel, outchannel), jnp.float32)
    b1 = scale * jax.random.normal(ks[1], (1, outchannel), jnp.float32)
    w2 = scale * jax.random.normal(ks[2], (inchannel, outchannel), jnp.float32)
    b2 = scale * jax.random.normal(ks[3], (1, outchannel), jnp.float32)
    wf1 = scale * jax.random.normal(ks[4], (inchannel, hidden), jnp.float32)
    bf1 = scale * jax.random.normal(ks[5], (1, hidden), jnp.float32)
    wf2 = scale * jax.random.normal(ks[6], (hidden, 2), jnp.float32)
    bf2 = scale * jax.random.normal(ks[7], (1, 2), jnp.float32)
    return (w1, b1, w2, b2, wf1, bf1, wf2, bf2)


def ass_reference(x, params):
    """Pure-JAX reference mirroring the PyTorch forward."""
    (w1, b1, w2, b2, wf1, bf1, wf2, bf2) = params
    out1 = x @ w1 + b1
    out2 = x @ w2 + b2
    h = jnp.maximum(x @ wf1 + bf1, 0.0)
    gate = jax.nn.softmax(h @ wf2 + bf2, axis=1)            # (B, 2)
    all_out = jnp.stack([out1, out2], axis=1)               # (B, 2, C_out)
    return jnp.sum(gate[:, :, None] * all_out, axis=1)      # (B, C_out)


if __name__ == "__main__":
    B, inchannel, outchannel, hidden = 16, 32, 32, 64
    key = jax.random.PRNGKey(0)
    kx, kp = jax.random.split(key)
    x = jax.random.normal(kx, (B, inchannel), jnp.float32)
    params = init_params(kp, inchannel, outchannel, hidden)

    prepped = prepare_ass_params(params)        # one-time weight fusion/padding
    out = ass_forward(x, prepped)
    jax.block_until_ready(out)

    ref = ass_reference(x, params)
    assert out.shape == (B, outchannel)
    assert jnp.allclose(out, ref, atol=1e-5, rtol=1e-5), "mismatch vs reference"
    print("KERNEL_OK")
</pallas_src>

<mosaic_0001>
module attributes {stable_mosaic.version = 11 : i64} {
  func.func @ass_kernel_resident(%arg0: i32, %arg1: memref<8x32xf32, #tpu.memory_space<vmem>>, %arg2: memref<32x384xf32, #tpu.memory_space<vmem>>, %arg3: memref<1x384xf32, #tpu.memory_space<vmem>>, %arg4: memref<1x128xf32, #tpu.memory_space<vmem>>, %arg5: memref<1x1xf32, #tpu.memory_space<smem>>, %arg6: memref<8x128xf32, #tpu.memory_space<vmem>>) attributes {dimension_semantics = [#tpu.dimension_semantics<parallel>], iteration_bounds = array<i64: 2>, scalar_prefetch = 0 : i64, scratch_operands = 0 : i64, tpu.core_type = #tpu.core_type<tc>, window_params = [{transform_indices = @transform_0, window_bounds = array<i64: 8, 32>}, {pipeline_mode = #tpu.pipeline_mode<synchronous>, transform_indices = @transform_1, window_bounds = array<i64: 32, 384>}, {pipeline_mode = #tpu.pipeline_mode<synchronous>, transform_indices = @transform_2, window_bounds = array<i64: 1, 384>}, {pipeline_mode = #tpu.pipeline_mode<synchronous>, transform_indices = @transform_3, window_bounds = array<i64: 1, 128>}, {transform_indices = @transform_4, window_bounds = array<i64: 1, 1>}, {transform_indices = @transform_5, window_bounds = array<i64: 8, 128>}]} {
    %c0 = arith.constant 0 : index
    %c0_0 = arith.constant 0 : index
    %0 = vector.load %arg1[%c0, %c0_0] : memref<8x32xf32, #tpu.memory_space<vmem>>, vector<8x32xf32>
    %c0_1 = arith.constant 0 : index
    %c0_2 = arith.constant 0 : index
    %1 = vector.load %arg2[%c0_1, %c0_2] : memref<32x384xf32, #tpu.memory_space<vmem>>, vector<32x384xf32>
    %cst = arith.constant dense<0.000000e+00> : vector<8x384xf32>
    %2 = tpu.matmul %0, %1, %cst {dimension_numbers = #tpu.dot_dimension_numbers<[1], [0], [0], [1], [0, 0, 1, 1], [], []>} : vector<8x32xf32>, vector<32x384xf32>, vector<8x384xf32> -> vector<8x384xf32>
    %c0_3 = arith.constant 0 : index
    %c0_4 = arith.constant 0 : index
    %3 = vector.load %arg3[%c0_3, %c0_4] : memref<1x384xf32, #tpu.memory_space<vmem>>, vector<1x384xf32>
    %4 = vector.broadcast %3 : vector<1x384xf32> to vector<8x384xf32>
    %5 = arith.addf %2, %4 : vector<8x384xf32>
    %6 = vector.extract_strided_slice %5 {offsets = [0, 256], sizes = [8, 128], strides = [1, 1]} : vector<8x384xf32> to vector<8x128xf32>
    %cst_5 = arith.constant 0.000000e+00 : f32
    %7 = vector.broadcast %cst_5 : f32 to vector<8x128xf32>
    %8 = arith.maximumf %6, %7 : vector<8x128xf32>
    %c0_6 = arith.constant 0 : index
    %c0_7 = arith.constant 0 : index
    %9 = vector.load %arg4[%c0_6, %c0_7] : memref<1x128xf32, #tpu.memory_space<vmem>>, vector<1x128xf32>
    %10 = vector.broadcast %9 : vector<1x128xf32> to vector<8x128xf32>
    %11 = arith.mulf %8, %10 : vector<8x128xf32>
    %cst_8 = arith.constant dense<0.000000e+00> : vector<8xf32>
    %12 = vector.multi_reduction <add>, %11, %cst_8 [1] : vector<8x128xf32> to vector<8xf32>
    %13 = vector.shape_cast %12 : vector<8xf32> to vector<8x1xf32>
    %c0_9 = arith.constant 0 : index
    %c0_10 = arith.constant 0 : index
    %14 = memref.load %arg5[%c0_9, %c0_10] : memref<1x1xf32, #tpu.memory_space<smem>>
    %15 = vector.broadcast %14 : f32 to vector<8x1xf32>
    %16 = arith.addf %13, %15 : vector<8x1xf32>
    %17 = arith.negf %16 : vector<8x1xf32>
    %18 = math.exp %17 : vector<8x1xf32>
    %cst_11 = arith.constant 1.000000e+00 : f32
    %19 = vector.broadcast %cst_11 : f32 to vector<8x1xf32>
    %20 = arith.addf %19, %18 : vector<8x1xf32>
    %21 = arith.divf %19, %20 : vector<8x1xf32>
    %22 = vector.extract_strided_slice %5 {offsets = [0, 0], sizes = [8, 128], strides = [1, 1]} : vector<8x384xf32> to vector<8x128xf32>
    %23 = vector.extract_strided_slice %5 {offsets = [0, 128], sizes = [8, 128], strides = [1, 1]} : vector<8x384xf32> to vector<8x128xf32>
    %24 = arith.subf %22, %23 : vector<8x128xf32>
    %25 = vector.broadcast %21 : vector<8x1xf32> to vector<8x128xf32>
    %26 = arith.mulf %25, %24 : vector<8x128xf32>
    %27 = arith.addf %23, %26 : vector<8x128xf32>
    %c0_12 = arith.constant 0 : index
    %c0_13 = arith.constant 0 : index
    %28 = vector.load %arg6[%c0_12, %c0_13] : memref<8x128xf32, #tpu.memory_space<vmem>>, vector<8x128xf32>
    tpu.vector_store %arg6[%c0_12, %c0_13], %27 {strides = array<i32>} : memref<8x128xf32, #tpu.memory_space<vmem>>, vector<8x128xf32>,
    return
  }
  func.func @transform_0(%arg0: i32) -> (i32, i32) {
    %c0_i32 = arith.constant 0 : i32
    %c0_i32_0 = arith.constant 0 : i32
    return %arg0, %c0_i32 : i32, i32
  }
  func.func @transform_1(%arg0: i32) -> (i32, i32) {
    %c0_i32 = arith.constant 0 : i32
    %c0_i32_0 = arith.constant 0 : i32
    %c0_i32_1 = arith.constant 0 : i32
    return %c0_i32, %c0_i32_0 : i32, i32
  }
  func.func @transform_2(%arg0: i32) -> (i32, i32) {
    %c0_i32 = arith.constant 0 : i32
    %c0_i32_0 = arith.constant 0 : i32
    %c0_i32_1 = arith.constant 0 : i32
    return %c0_i32, %c0_i32_0 : i32, i32
  }
  func.func @transform_3(%arg0: i32) -> (i32, i32) {
    %c0_i32 = arith.constant 0 : i32
    %c0_i32_0 = arith.constant 0 : i32
    %c0_i32_1 = arith.constant 0 : i32
    return %c0_i32, %c0_i32_0 : i32, i32
  }
  func.func @transform_4(%arg0: i32) -> (i32, i32) {
    %c0_i32 = arith.constant 0 : i32
    %c0_i32_0 = arith.constant 0 : i32
    %c0_i32_1 = arith.constant 0 : i32
    return %c0_i32, %c0_i32_0 : i32, i32
  }
  func.func @transform_5(%arg0: i32) -> (i32, i32) {
    %c0_i32 = arith.constant 0 : i32
    %c0_i32_0 = arith.constant 0 : i32
    return %arg0, %c0_i32 : i32, i32
  }
}

module attributes {stable_mosaic.version = 11 : i64} {
  func.func @ass_kernel_resident(%arg0: i32, %arg1: memref<8x32xf32, #tpu.memory_space<vmem>>, %arg2: memref<32x384xf32, #tpu.memory_space<vmem>>, %arg3: memref<1x384xf32, #tpu.memory_space<vmem>>, %arg4: memref<1x128xf32, #tpu.memory_space<vmem>>, %arg5: memref<1x1xf32, #tpu.memory_space<smem>>, %arg6: memref<8x128xf32, #tpu.memory_space<vmem>>) attributes {dimension_semantics = [#tpu.dimension_semantics<parallel>], iteration_bounds = array<i64: 2>, scalar_prefetch = 0 : i64, scratch_operands = 0 : i64, tpu.core_type = #tpu.core_type<tc>, window_params = [{transform_indices = @transform_0, window_bounds = array<i64: 8, 32>}, {pipeline_mode = #tpu.pipeline_mode<synchronous>, transform_indices = @transform_1, window_bounds = array<i64: 32, 384>}, {pipeline_mode = #tpu.pipeline_mode<synchronous>, transform_indices = @transform_2, window_bounds = array<i64: 1, 384>}, {pipeline_mode = #tpu.pipeline_mode<synchronous>, transform_indices = @transform_3, window_bounds = array<i64: 1, 128>}, {transform_indices = @transform_4, window_bounds = array<i64: 1, 1>}, {transform_indices = @transform_5, window_bounds = array<i64: 8, 128>}]} {
    %c0 = arith.constant 0 : index
    %c0_0 = arith.constant 0 : index
    %0 = vector.load %arg1[%c0, %c0_0] : memref<8x32xf32, #tpu.memory_space<vmem>>, vector<8x32xf32>
    %c0_1 = arith.constant 0 : index
    %c0_2 = arith.constant 0 : index
    %1 = vector.load %arg2[%c0_1, %c0_2] : memref<32x384xf32, #tpu.memory_space<vmem>>, vector<32x384xf32>
    %cst = arith.constant dense<0.000000e+00> : vector<8x384xf32>
    %2 = tpu.matmul %0, %1, %cst {dimension_numbers = #tpu.dot_dimension_numbers<[1], [0], [0], [1], [0, 0, 1, 1], [], []>} : vector<8x32xf32>, vector<32x384xf32>, vector<8x384xf32> -> vector<8x384xf32>
    %c0_3 = arith.constant 0 : index
    %c0_4 = arith.constant 0 : index
    %3 = vector.load %arg3[%c0_3, %c0_4] : memref<1x384xf32, #tpu.memory_space<vmem>>, vector<1x384xf32>
    %4 = vector.broadcast %3 : vector<1x384xf32> to vector<8x384xf32>
    %5 = arith.addf %2, %4 : vector<8x384xf32>
    %6 = vector.extract_strided_slice %5 {offsets = [0, 256], sizes = [8, 128], strides = [1, 1]} : vector<8x384xf32> to vector<8x128xf32>
    %cst_5 = arith.constant 0.000000e+00 : f32
    %7 = vector.broadcast %cst_5 : f32 to vector<8x128xf32>
    %8 = arith.maximumf %6, %7 : vector<8x128xf32>
    %c0_6 = arith.constant 0 : index
    %c0_7 = arith.constant 0 : index
    %9 = vector.load %arg4[%c0_6, %c0_7] : memref<1x128xf32, #tpu.memory_space<vmem>>, vector<1x128xf32>
    %10 = vector.broadcast %9 : vector<1x128xf32> to vector<8x128xf32>
    %11 = arith.mulf %8, %10 : vector<8x128xf32>
    %cst_8 = arith.constant dense<0.000000e+00> : vector<8xf32>
    %12 = vector.multi_reduction <add>, %11, %cst_8 [1] : vector<8x128xf32> to vector<8xf32>
    %13 = vector.shape_cast %12 : vector<8xf32> to vector<8x1xf32>
    %c0_9 = arith.constant 0 : index
    %c0_10 = arith.constant 0 : index
    %14 = memref.load %arg5[%c0_9, %c0_10] : memref<1x1xf32, #tpu.memory_space<smem>>
    %15 = vector.broadcast %14 : f32 to vector<8x1xf32>
    %16 = arith.addf %13, %15 : vector<8x1xf32>
    %17 = arith.negf %16 : vector<8x1xf32>
    %18 = math.exp %17 : vector<8x1xf32>
    %cst_11 = arith.constant 1.000000e+00 : f32
    %19 = vector.broadcast %cst_11 : f32 to vector<8x1xf32>
    %20 = arith.addf %19, %18 : vector<8x1xf32>
    %21 = arith.divf %19, %20 : vector<8x1xf32>
    %22 = vector.extract_strided_slice %5 {offsets = [0, 0], sizes = [8, 128], strides = [1, 1]} : vector<8x384xf32> to vector<8x128xf32>
    %23 = vector.extract_strided_slice %5 {offsets = [0, 128], sizes = [8, 128], strides = [1, 1]} : vector<8x384xf32> to vector<8x128xf32>
    %24 = arith.subf %22, %23 : vector<8x128xf32>
    %25 = vector.broadcast %21 : vector<8x1xf32> to vector<8x128xf32>
    %26 = arith.mulf %25, %24 : vector<8x128xf32>
    %27 = arith.addf %23, %26 : vector<8x128xf32>
    %c0_12 = arith.constant 0 : index
    %c0_13 = arith.constant 0 : index
    %28 = vector.load %arg6[%c0_12, %c0_13] : memref<8x128xf32, #tpu.memory_space<vmem>>, vector<8x128xf32>
    tpu.vector_store %arg6[%c0_12, %c0_13], %27 {strides = array<i32>} : memref<8x128xf32, #tpu.memory_space<vmem>>, vector<8x128xf32>,
    return
  }
  func.func @transform_0(%arg0: i32) -> (i32, i32) {
    %c0_i32 = arith.constant 0 : i32
    %c0_i32_0 = arith.constant 0 : i32
    return %arg0, %c0_i32 : i32, i32
  }
  func.func @transform_1(%arg0: i32) -> (i32, i32) {
    %c0_i32 = arith.constant 0 : i32
    %c0_i32_0 = arith.constant 0 : i32
    %c0_i32_1 = arith.constant 0 : i32
    return %c0_i32, %c0_i32_0 : i32, i32
  }
  func.func @transform_2(%arg0: i32) -> (i32, i32) {
    %c0_i32 = arith.constant 0 : i32
    %c0_i32_0 = arith.constant 0 : i32
    %c0_i32_1 = arith.constant 0 : i32
    return %c0_i32, %c0_i32_0 : i32, i32
  }
  func.func @transform_3(%arg0: i32) -> (i32, i32) {
    %c0_i32 = arith.constant 0 : i32
    %c0_i32_0 = arith.constant 0 : i32
    %c0_i32_1 = arith.constant 0 : i32
    return %c0_i32, %c0_i32_0 : i32, i32
  }
  func.func @transform_4(%arg0: i32) -> (i32, i32) {
    %c0_i32 = arith.constant 0 : i32
    %c0_i32_0 = arith.constant 0 : i32
    %c0_i32_1 = arith.constant 0 : i32
    return %c0_i32, %c0_i32_0 : i32, i32
  }
  func.func @transform_5(%arg0: i32) -> (i32, i32) {
    %c0_i32 = arith.constant 0 : i32
    %c0_i32_0 = arith.constant 0 : i32
    return %arg0, %c0_i32 : i32, i32
  }
}

</mosaic_0001>

<bundles_post_ra>
// kernel: tpu_custom_call.1
= control target key start
LH: loop header
LB: loop body
LE: loop exit
PB: predicated region body
PF: predicated region fallthrough
CT: control target
= control target key end

     0   :  { %s1043_s0 = inlined_call_operand.hbm [shape: f32[16,32], index: 0, kind: input, shape index: {}]   ;;  %s1044_s1 = inlined_call_operand.hbm [shape: f32[32,384], index: 1, kind: input, shape index: {}]   ;;  %s1045_s2 = inlined_call_operand.vmem [shape: f32[1,384], index: 2, kind: input, shape index: {}]   ;;  %s1046_s3 = inlined_call_operand.vmem [shape: f32[1,128], index: 3, kind: input, shape index: {}]   ;;  %s1047_s4 = inlined_call_operand.<no memory space> [shape: f32[1,1], index: 4, kind: input, shape index: {}]   ;;  %s1048_s5 = inlined_call_operand.hbm [shape: f32[16,128], index: 5, kind: output, shape index: {}]  }
   0x1   :  { %10 = sst [smem:[#allocation2]] %s1047_s4 }
   0x2   :  { %11 = vsyncpa [#allocation4], 0 }
   0x3   :  { %13 = vsyncpa [#allocation4 + $0x1], 0 }
   0x4   :  { %14 = vsyncpa [#allocation7], 0 }
   0x5   :  { %15 = vsyncpa [#allocation5], 0 }
   0x6   :  { %17 = vsyncpa [#allocation5 + $0x1], 0  ;;  %s834_s20 = smov 0   ;;  %s836_s21 = smov 0  }
   0x7   :  { %s838_s22 = smov 0   ;;  %s840_s23 = smov 0  }
   0x8 LB: > { %s855_s4 = sadd.s32 4294967295, %s791_s23   ;;  %s549_s24 = sadd.s32 4294967294, %s791_s23   ;;  %s791_s23 = sphi %s840_s23, %s1068_s23   ;;  %s787_s22 = sphi %s838_s22, %s1067_s22   ;;  %s783_s21 = sphi %s836_s21, %s1066_s21   ;;  %s779_s20 = sphi %s834_s20, %s1065_s20  }
   0x9   : > { %p43_p0 = scmp.ne.s32.totalorder %s783_s21, %s779_s20  ;;  %p1049_p1 = scmp.eq.s32.totalorder %s855_s4, 0 }
   0xa   : > { %p157_p3 = scmp.eq.s32.totalorder %s549_s24, 1  ;;  %p550_p5 = scmp.ge.s32.totalorder %s791_s23, 1 }
   0xb   : > { %p864_p4 = por %p1049_p1, %p43_p0  ;;  %p164_p7 = scmp.lt.s32.totalorder %s791_s23, 3 }
   0xc   : > { %p869_p6 = por %p157_p3, %p43_p0  ;;  %s793_s28 = smov [#allocation6]  }
   0xd   : > { %s1052_s25 = scalar_select %p864_p4, 1, 0 }
   0xe   : > { %s1053_s26 = scalar_select %p869_p6, 1, 0 }
   0xf   : > { %p874_p8 = pnand %p550_p5, %p164_p7  ;;  %s176_s29 = sshll.u32 %s793_s28, 4  ;;  %s878_s29 = int_to_ptr.vmem [resolvable:$true] %s176_s29 }
  0x10   : > { %s890_s6 = sadd.s32 1, %s791_s23   ;;  %s30_s7 = sadd.s32 1, %s787_s22 }
  0x11   : > { %s1054_s27 = scalar_select %p874_p8, 1, 0 }
  0x12   : > { %p605_p9 = pneg %p874_p8  ;;  %s27_s8 = ssub.s32 %s791_s23, %s890_s6 }
  0x13   : > { %s663_s11 = scalar_lea.hbm %s1044_s1, 1536 }
  0x14   : > { %p885_p11 = pnand %p605_p9, %p1049_p1  ;;  %p664_p12 = scmp.ne.s32.totalorder %s1044_s1, %s663_s11 }
  0x15   : > { %p670_p5 = scmp.lt.u32.totalorder %s663_s11, %s1044_s1 }
  0x16   : > { %p665_p13 = pneg %p885_p11 }
  0x18   : > { %p666_p0 = pnand %p665_p13, %p664_p12 }
  0x1a   : > { %p667_p3 = pneg %p666_p0 }
  0x1c   : > { %p672_p7 = pnand %p670_p5, %p667_p3 }
  0x1e   : > { %675 = shalt.err (!%p672_p7)
}
  0x1f   : > { %s676_s16 = scalar_lea.vmem %s878_s29, 1536  ;;  %p684_p2 = scmp.lt.s32.totalorder %s878_s29, %s878_s29 }
  0x20   : > { %p677_p9 = scmp.ne.s32.totalorder %s878_s29, %s676_s16  ;;  %p685_p6 = scmp.lt.s32.totalorder %s676_s16, %s676_s16 }
  0x22   : > { %p679_p10 = pnand %p677_p9, %p665_p13  ;;  %p686_p4 = por %p685_p6, %p684_p2 }
  0x24   : > { %p680_p1 = pneg %p679_p10 }
  0x26   : > { %p687_p8 = pnand %p686_p4, %p680_p1 }
  0x28   : > { %690 = shalt.err (!%p687_p8)
}
  0x29   : > { %s794_s17 = smov 384   ;;  %s795_s18 = smov 24  }
  0x2a   : > { %608 = dma.hbm_to_vmem [thread:$0]  (!%p885_p11), %s1044_s1, 1536, %s878_s29, [#allocation7], %s794_s17, %s794_s17, %s795_s18  }
  0x2b   : > { %p28_p2 = scmp.eq.s32.totalorder %s27_s8, 0  ;;  %p37_p1 = scmp.ne.s32.totalorder %s787_s22, %s783_s21 }
  0x2c   : > { %p38_p4 = scmp.eq.s32.totalorder %s791_s23, 0  ;;  %p618_p6 = scmp.lt.s32.totalorder %s791_s23, 2 }
  0x2d   : > { %s921_s28 = scalar_select %p28_p2, %s787_s22, %s30_s7  }
  0x2e   : > { %p39_p8 = por %p38_p4, %p37_p1  ;;  %p1056_p10 = scmp.eq.s32.totalorder %s855_s4, 1 }
  0x2f   : > { %s199_s10 = sand.u32 1, %s787_s22   ;;  %s554_s11 = sshll.u32 %s791_s23, 7 }
  0x30   : > { %p925_p12 = por %p1056_p10, %p37_p1  ;;  %s553_s12 = sshll.u32 %s199_s10, 3 }
  0x31   : > { %s934_s14 = scalar_lea.hbm %s1043_s0, %s554_s11  ;;  %s203_s29 = scalar_lea.vmem [#allocation3], %s553_s12 }
  0x32   : > { %s210_s7 = sshll.u32 %s203_s29, 4  ;;  %p936_p11 = pnand %p618_p6, %p39_p8  ;;  %s940_s7 = int_to_ptr.vmem [resolvable:$true] %s210_s7 }
  0x33   : > { %s200_s15 = scalar_lea.sflag [#allocation4], %s199_s10  ;;  %s691_s16 = scalar_lea.hbm %s934_s14, 128 }
  0x34   : > { %p692_p13 = scmp.ne.s32.totalorder %s934_s14, %s691_s16  ;;  %p693_p0 = pneg %p936_p11 }
  0x35   : > { %s696_s19 = scalar_lea.hbm %s1043_s0, 256  ;;  %p697_p7 = scmp.lt.u32.totalorder %s934_s14, %s1043_s0 }
  0x36   : > { %p694_p3 = pnand %p693_p0, %p692_p13  ;;  %p698_p9 = scmp.lt.u32.totalorder %s696_s19, %s691_s16 }
  0x37   : > { %p700_p1 = scmp.lt.u32.totalorder %s691_s16, %s934_s14 }
  0x38   : > { %p695_p5 = pneg %p694_p3  ;;  %p699_p2 = por %p698_p9, %p697_p7 }
  0x3a   : > { %p701_p4 = por %p700_p1, %p699_p2 }
  0x3c   : > { %p702_p6 = pnand %p701_p4, %p695_p5 }
  0x3e   : > { %705 = shalt.err (!%p702_p6)
}
  0x3f   : > { %s706_s10 = scalar_lea.vmem %s940_s7, 128  ;;  %s796_s12 = smov [#allocation3]  }
  0x40   : > { %p707_p8 = scmp.ne.s32.totalorder %s940_s7, %s706_s10  ;;  %s711_s30 = sshll.u32 %s796_s12, 4  ;;  %s712_s30 = int_to_ptr.vmem [resolvable:$false] %s711_s30 }
  0x41   : > { %s713_s13 = scalar_lea.vmem %s712_s30, 256  ;;  %p714_p3 = scmp.lt.s32.totalorder %s940_s7, %s712_s30 }
  0x42   : > { %p709_p10 = pnand %p707_p8, %p693_p0  ;;  %p715_p7 = scmp.lt.s32.totalorder %s713_s13, %s706_s10 }
  0x44   : > { %p710_p13 = pneg %p709_p10  ;;  %p716_p9 = por %p715_p7, %p714_p3 }
  0x46   : > { %p717_p2 = pnand %p716_p9, %p710_p13 }
  0x48   : > { %720 = shalt.err (!%p717_p2)
}
  0x49   : > { %612 = dma.hbm_to_vmem [thread:$0]  (!%p936_p11), %s934_s14, 128, %s940_s7, %s200_s15  }
  0x4a   : > { %p1059_p5 = scmp.ne.s32.totalorder %s1054_s27, 0 }
  0x4b   : > { %s970_s29 = sand.u32 (!%p1059_p5), 1, %s783_s21   ;;  %p1060_p0 = scmp.ne.s32.totalorder (!%p1059_p5), %s1052_s25, 0 }
  0x4c   : > { %219 = sbr.rel (%p1059_p5) target bundleno = 503 (0x1f7), region = 40  ;;  %s556_s16 = sshll.u32 (!%p1059_p5), %s970_s29, 3 }
  0x4d   : > { %s222_s17 = scalar_lea.sflag (!%p1059_p5), [#allocation4], %s970_s29  ;;  %s976_s18 = scalar_lea.vmem (!%p1059_p5), [#allocation3], %s556_s16 }
  0x53   : > { %766 = dma.done.wait (%p1060_p0), %s222_s17, 128  }
  0x54   : > { %768 = vsyncadd (%p1060_p0), %s222_s17, 4294967168  ;;  %p1061_p11 = scmp.eq.s32.totalorder %s855_s4, 0 }
  0x56   : > { %770 = dma.done.wait (%p1061_p11), [#allocation7], 1536   ;;  %p1062_p1 = pmov %p1061_p11 }
  0x57   : > { %v797_v0 = vmov 0.0|0.0   ;;  %vm798_vm0 = vmmov 0   ;;  %v799_v1 = vmov 0.0   ;;  %v259_v2 = vld [vmem:[#allocation6 + $0x10] sm:$0xff]  ;;  %v262_v3 = vld [vmem:[#allocation6 + $0x28] sm:$0xff]  ;;  %v265_v4 = vld [vmem:[#allocation6 + $0x40] sm:$0xff]  ;;  %v271_v21 = vlaneseq }
  0x58   : > { %772 = vsyncadd (%p1062_p1), [#allocation7], 4294965760  ;;  %591 = vmatprep.subr.bf16.mxu1 %v797_v0  ;;  %580 = vmatprep.mubr.msk.f32.mxu1 %vm798_vm0, %v799_v1  ;;  %v592_v5 = vpack.c.bf16 %v262_v3, %v259_v2  ;;  %v268_v6 = vld [vmem:[#allocation6 + $0x58] sm:$0xff]  ;;  %v258_v7 = vld [vmem:[#allocation6 + $0x8] sm:$0xff]  ;;  %vm286_vm1 = vcmask 261120   ;;  %s442_s8 = sld [smem:[#allocation2]] }
  0x59   : > { %354 = vmatprep.mubr.f32.mxu0 %v799_v1  ;;  %v261_v8 = vld [vmem:[#allocation6 + $0x20] sm:$0xff]  ;;  %v260_v10 = vld [vmem:[#allocation6 + $0x18] sm:$0xff]  ;;  %v595_v11 = vpack.c.bf16 %v268_v6, %v265_v4  ;;  %v267_v15 = vld [vmem:[#allocation6 + $0x50] sm:$0xff]  ;;  %v272_v22 = vshrl.u32 %v271_v21, 7  ;;  %s564_s15 = sshll.u32 %s855_s4, 7  ;;  %s255_s19 = scalar_lea.vmem [#allocation8], %s556_s16 }
  0x5a   : > { %v257_v9 = vld [vmem:[#allocation6] sm:$0xff]  ;;  %593 = vmatpush3.bf16.msra.mxu1 %v592_v5  ;;  %v583_v12 = vpack.c.bf16 %v261_v8, %v258_v7  ;;  %v264_v14 = vld [vmem:[#allocation6 + $0x38] sm:$0xff]  ;;  %v263_v16 = vld [vmem:[#allocation6 + $0x30] sm:$0xff]  ;;  %s469_s24 = sshll.u32 %s255_s19, 4  ;;  %s999_s12 = scalar_lea.hbm %s1048_s5, %s564_s15  ;;  %s1001_s24 = int_to_ptr.vmem [resolvable:$true] %s469_s24 }
  0x5b   : > { %v585_v13 = vpack.c.bf16 %v260_v10, %v257_v9  ;;  %594 = vmatprep.subr.bf16.mxu1 %v797_v0  ;;  %v587_v17 = vpack.c.bf16 %v267_v15, %v264_v14  ;;  %v266_v18 = vld [vmem:[#allocation6 + $0x48] sm:$0xff]  ;;  %v256_v20 = vld [vmem:[%s976_s18] sm:$0xff]  ;;  %v281_v23 = vsub.s32 2, %v272_v22  ;;  %v273_v32 = vsub.s32 0, %v272_v22  ;;  %s456_s30 = scalar_lea.sflag [#allocation5], %s970_s29  ;;  %s721_s13 = scalar_lea.vmem %s1001_s24, 128 }
  0x5c   : > { %584 = vmatprep.subr.bf16.mxu0 %v583_v12  ;;  %v589_v19 = vpack.c.bf16 %v266_v18, %v263_v16  ;;  %v269_v24 = vld [vmem:[%s1045_s2] sm:$0x7]  ;;  %v277_v34 = vsub.s32 1, %v272_v22  ;;  %p722_p4 = scmp.ne.s32.totalorder %s1001_s24, %s721_s13  ;;  %s800_s4 = smov [#allocation8]  }
  0x5d   : > { %586 = vmatpush1.bf16.msra.mxu0 %v585_v13  ;;  %v282_v25 = vrot.slane %v269_v24, %v281_v23  ;;  %v561_v29 = vld [vmem:[%s1046_s3] ss:$0 sm:$0xff]  ;;  %v274_v36 = vrot.slane %v269_v24, %v273_v32  ;;  %s725_s16 = sshll.u32 %s800_s4, 4  ;;  %s726_s16 = int_to_ptr.vmem [resolvable:$false] %s725_s16 }
  0x5e   : > { %596 = vmatpush3.bf16.msra.mxu1 %v595_v11  ;;  %588 = vmatprep.subr.bf16.mxu0 %v587_v17  ;;  %v278_v37 = vrot.slane %v269_v24, %v277_v34  ;;  %v443_v41 = vstv %s442_s8  ;;  %p723_p6 = pnand %p722_p4, %p925_p12  ;;  %s727_s17 = scalar_lea.vmem %s726_s16, 256 }
  0x5f   : > { %p728_p10 = scmp.lt.s32.totalorder %s1001_s24, %s726_s16  ;;  %p729_p13 = scmp.lt.s32.totalorder %s727_s17, %s721_s13 }
  0x60   : > { %p724_p8 = pneg %p723_p6 }
  0x61   : > { %581 = vmatmul.mubr.msk.f32.vlgmr.msra.gmra.mrb[0].mxu1 %vm286_vm1, %v256_v20  ;;  %590 = vmatpush1.bf16.msra.mxu0 %v589_v19  ;;  %p730_p3 = por %p729_p13, %p728_p10 }
  0x63   : > { %p731_p7 = pnand %p730_p3, %p724_p8 }
  0x64   : > { %559 = vmatmul.mubr.msk.f32.vlgmr.msra.gmra.mrb[0].mxu0 %vm286_vm1, %v256_v20 }
 0x134   : > { %v427_v26 = vpop.f32.mrb[0].mxu1 }
 0x135   : > { %v428_v27 = vadd.f32 %v427_v26, %v282_v25  ;;  %v582_v28 = vpop.f32.mrb[1].mxu1 }
 0x137   : > { %v431_v30 = vmax.f32 %v428_v27, 0.0  ;;  %v356_v33 = vpop.f32.mrb[0].mxu0 }
 0x138   : > { %v358_v35 = vpop.f32.mrb[1].mxu0  ;;  %v357_v38 = vadd.f32 %v356_v33, %v274_v36 }
 0x139   : > { %v439_v31 = vmul.f32 %v561_v29, %v431_v30  ;;  %v359_v39 = vadd.f32 %v358_v35, %v278_v37 }
 0x13b   : > { %440 = vadd.xlane.f32.xlu0 %v439_v31  ;;  %v451_v40 = vsub.f32 %v357_v38, %v359_v39 }
 0x1c8   : > { %v441_v42 = vpop.xlane.xlu0 %440 }
 0x1c9   : > { %v444_v43 = vadd.f32 %v443_v41, %v441_v42 }
 0x1cb   : > { %v562_v44 = vmul.f32 -1.442695, %v444_v43 }
 0x1cd   : > { %659 = vpow2.f32 %v562_v44 }
 0x1d7   : > { %v660_v45 = vpop.eup %659 }
 0x1d8   : > { %v448_v46 = vadd.f32 1.0, %v660_v45 }
 0x1da   : > { %661 = vrcp.f32 %v448_v46 }
 0x1e4   : > { %v662_v47 = vpop.eup %661 }
 0x1e5   : > { %v452_v48 = vmul.f32 %v662_v47, %v451_v40 }
 0x1e7   : > { %v453_v49 = vadd.f32 %v452_v48, %v359_v39 }
 0x1e9   : > { %454 = vst [vmem:[%s255_s19] sm:$0xff] %v453_v49 }
 0x1ea   : > { %734 = shalt.err (!%p731_p7)
}
 0x1eb   : > { %s735_s29 = scalar_lea.hbm %s999_s12, 128  ;;  %s739_s27 = scalar_lea.hbm %s1048_s5, 256 }
 0x1ec   : > { %p736_p9 = scmp.ne.s32.totalorder %s999_s12, %s735_s29  ;;  %p740_p0 = scmp.lt.u32.totalorder %s999_s12, %s1048_s5 }
 0x1ed   : > { %p741_p11 = scmp.lt.u32.totalorder %s739_s27, %s735_s29  ;;  %p743_p4 = scmp.lt.u32.totalorder %s735_s29, %s999_s12 }
 0x1ee   : > { %p737_p2 = pnand %p736_p9, %p925_p12 }
 0x1ef   : > { %p742_p1 = por %p741_p11, %p740_p0 }
 0x1f0   : > { %p738_p5 = pneg %p737_p2 }
 0x1f1   : > { %p744_p6 = por %p743_p4, %p742_p1 }
 0x1f3   : > { %p745_p8 = pnand %p744_p6, %p738_p5 }
 0x1f5   : > { %748 = shalt.err (!%p745_p8)
}
 0x1f6   : > { %603 = dma.vmem_to_hbm [thread:$0]  (%p925_p12), %s1001_s24, 128, %s999_s12, %s456_s30  }
 0x1f7 PF: > { %s481_s8 = sand.u32 1, %s779_s20   ;;  %p1063_p10 = scmp.ne.s32.totalorder %s1053_s26, 0 }
 0x1f8   : > { %p1064_p13 = scmp.ge.s32.totalorder %s791_s23, 2  ;;  %s482_s15 = scalar_lea.sflag [#allocation5], %s481_s8 }
 0x1fa   : > { %p614_p3 = pnand %p1064_p13, %p1063_p10 }
 0x1fc   : > { %774 = dma.done.wait (!%p614_p3), %s482_s15, 128  }
 0x1fd   : > { %776 = vsyncadd (!%p614_p3), %s482_s15, 4294967168  ;;  %p20_p7 = scmp.ge.s32.totalorder %s890_s6, 4   ;;  %s1065_s20 = smov %s783_s21 }
 0x1fe   : > { %s1066_s21 = smov %s787_s22  ;;  %s1067_s22 = smov %s921_s28 }
 0x1ff   : > { %s1068_s23 = smov %s890_s6  ;;  %22 = sbr.rel (!%p20_p7) target bundleno = 8 (0x8), region = 89 }
 0x206   :  { %487 = vsyncpa [#allocation4], 1 }
 0x207   :  { %489 = vsyncpa [#allocation4 + $0x1], 1 }
 0x208   :  { %490 = vsyncpa [#allocation7], 1 }
 0x209   :  { %491 = vsyncpa [#allocation5], 1 }
 0x20a   :  { %493 = vsyncpa [#allocation5 + $0x1], 1 }

// kernel: tpu_custom_call.1
= control target key start
LH: loop header
LB: loop body
LE: loop exit
PB: predicated region body
PF: predicated region fallthrough
CT: control target
= control target key end

     0   :  { %s1043_s0 = inlined_call_operand.hbm [shape: f32[16,32], index: 0, kind: input, shape index: {}]   ;;  %s1044_s1 = inlined_call_operand.hbm [shape: f32[32,384], index: 1, kind: input, shape index: {}]   ;;  %s1045_s2 = inlined_call_operand.vmem [shape: f32[1,384], index: 2, kind: input, shape index: {}]   ;;  %s1046_s3 = inlined_call_operand.vmem [shape: f32[1,128], index: 3, kind: input, shape index: {}]   ;;  %s1047_s4 = inlined_call_operand.<no memory space> [shape: f32[1,1], index: 4, kind: input, shape index: {}]   ;;  %s1048_s5 = inlined_call_operand.hbm [shape: f32[16,128], index: 5, kind: output, shape index: {}]  }
   0x1   :  { %10 = sst [smem:[#allocation2]] %s1047_s4 }
   0x2   :  { %11 = vsyncpa [#allocation4], 0 }
   0x3   :  { %13 = vsyncpa [#allocation4 + $0x1], 0 }
   0x4   :  { %14 = vsyncpa [#allocation7], 0 }
   0x5   :  { %15 = vsyncpa [#allocation5], 0 }
   0x6   :  { %17 = vsyncpa [#allocation5 + $0x1], 0  ;;  %s834_s20 = smov 0   ;;  %s836_s21 = smov 0  }
   0x7   :  { %s838_s22 = smov 0   ;;  %s840_s23 = smov 0  }
   0x8 LB: > { %s855_s4 = sadd.s32 4294967295, %s791_s23   ;;  %s549_s24 = sadd.s32 4294967294, %s791_s23   ;;  %s791_s23 = sphi %s840_s23, %s1068_s23   ;;  %s787_s22 = sphi %s838_s22, %s1067_s22   ;;  %s783_s21 = sphi %s836_s21, %s1066_s21   ;;  %s779_s20 = sphi %s834_s20, %s1065_s20  }
   0x9   : > { %p43_p0 = scmp.ne.s32.totalorder %s783_s21, %s779_s20  ;;  %p1049_p1 = scmp.eq.s32.totalorder %s855_s4, 0 }
   0xa   : > { %p157_p3 = scmp.eq.s32.totalorder %s549_s24, 1  ;;  %p550_p5 = scmp.ge.s32.totalorder %s791_s23, 1 }
   0xb   : > { %p864_p4 = por %p1049_p1, %p43_p0  ;;  %p164_p7 = scmp.lt.s32.totalorder %s791_s23, 3 }
   0xc   : > { %p869_p6 = por %p157_p3, %p43_p0  ;;  %s793_s28 = smov [#allocation6]  }
   0xd   : > { %s1052_s25 = scalar_select %p864_p4, 1, 0 }
   0xe   : > { %s1053_s26 = scalar_select %p869_p6, 1, 0 }
   0xf   : > { %p874_p8 = pnand %p550_p5, %p164_p7  ;;  %s176_s29 = sshll.u32 %s793_s28, 4  ;;  %s878_s29 = int_to_ptr.vmem [resolvable:$true] %s176_s29 }
  0x10   : > { %s890_s6 = sadd.s32 1, %s791_s23   ;;  %s30_s7 = sadd.s32 1, %s787_s22 }
  0x11   : > { %s1054_s27 = scalar_select %p874_p8, 1, 0 }
  0x12   : > { %p605_p9 = pneg %p874_p8  ;;  %s27_s8 = ssub.s32 %s791_s23, %s890_s6 }
  0x13   : > { %s663_s11 = scalar_lea.hbm %s1044_s1, 1536 }
  0x14   : > { %p885_p11 = pnand %p605_p9, %p1049_p1  ;;  %p664_p12 = scmp.ne.s32.totalorder %s1044_s1, %s663_s11 }
  0x15   : > { %p670_p5 = scmp.lt.u32.totalorder %s663_s11, %s1044_s1 }
  0x16   : > { %p665_p13 = pneg %p885_p11 }
  0x18   : > { %p666_p0 = pnand %p665_p13, %p664_p12 }
  0x1a   : > { %p667_p3 = pneg %p666_p0 }
  0x1c   : > { %p672_p7 = pnand %p670_p5, %p667_p3 }
  0x1e   : > { %675 = shalt.err (!%p672_p7)
}
  0x1f   : > { %s676_s16 = scalar_lea.vmem %s878_s29, 1536  ;;  %p684_p2 = scmp.lt.s32.totalorder %s878_s29, %s878_s29 }
  0x20   : > { %p677_p9 = scmp.ne.s32.totalorder %s878_s29, %s676_s16  ;;  %p685_p6 = scmp.lt.s32.totalorder %s676_s16, %s676_s16 }
  0x22   : > { %p679_p10 = pnand %p677_p9, %p665_p13  ;;  %p686_p4 = por %p685_p6, %p684_p2 }
  0x24   : > { %p680_p1 = pneg %p679_p10 }
  0x26   : > { %p687_p8 = pnand %p686_p4, %p680_p1 }
  0x28   : > { %690 = shalt.err (!%p687_p8)
}
  0x29   : > { %s794_s17 = smov 384   ;;  %s795_s18 = smov 24  }
  0x2a   : > { %608 = dma.hbm_to_vmem [thread:$0]  (!%p885_p11), %s1044_s1, 1536, %s878_s29, [#allocation7], %s794_s17, %s794_s17, %s795_s18  }
  0x2b   : > { %p28_p2 = scmp.eq.s32.totalorder %s27_s8, 0  ;;  %p37_p1 = scmp.ne.s32.totalorder %s787_s22, %s783_s21 }
  0x2c   : > { %p38_p4 = scmp.eq.s32.totalorder %s791_s23, 0  ;;  %p618_p6 = scmp.lt.s32.totalorder %s791_s23, 2 }
  0x2d   : > { %s921_s28 = scalar_select %p28_p2, %s787_s22, %s30_s7  }
  0x2e   : > { %p39_p8 = por %p38_p4, %p37_p1  ;;  %p1056_p10 = scmp.eq.s32.totalorder %s855_s4, 1 }
  0x2f   : > { %s199_s10 = sand.u32 1, %s787_s22   ;;  %s554_s11 = sshll.u32 %s791_s23, 7 }
  0x30   : > { %p925_p12 = por %p1056_p10, %p37_p1  ;;  %s553_s12 = sshll.u32 %s199_s10, 3 }
  0x31   : > { %s934_s14 = scalar_lea.hbm %s1043_s0, %s554_s11  ;;  %s203_s29 = scalar_lea.vmem [#allocation3], %s553_s12 }
  0x32   : > { %s210_s7 = sshll.u32 %s203_s29, 4  ;;  %p936_p11 = pnand %p618_p6, %p39_p8  ;;  %s940_s7 = int_to_ptr.vmem [resolvable:$true] %s210_s7 }
  0x33   : > { %s200_s15 = scalar_lea.sflag [#allocation4], %s199_s10  ;;  %s691_s16 = scalar_lea.hbm %s934_s14, 128 }
  0x34   : > { %p692_p13 = scmp.ne.s32.totalorder %s934_s14, %s691_s16  ;;  %p693_p0 = pneg %p936_p11 }
  0x35   : > { %s696_s19 = scalar_lea.hbm %s1043_s0, 256  ;;  %p697_p7 = scmp.lt.u32.totalorder %s934_s14, %s1043_s0 }
  0x36   : > { %p694_p3 = pnand %p693_p0, %p692_p13  ;;  %p698_p9 = scmp.lt.u32.totalorder %s696_s19, %s691_s16 }
  0x37   : > { %p700_p1 = scmp.lt.u32.totalorder %s691_s16, %s934_s14 }
  0x38   : > { %p695_p5 = pneg %p694_p3  ;;  %p699_p2 = por %p698_p9, %p697_p7 }
  0x3a   : > { %p701_p4 = por %p700_p1, %p699_p2 }
  0x3c   : > { %p702_p6 = pnand %p701_p4, %p695_p5 }
  0x3e   : > { %705 = shalt.err (!%p702_p6)
}
  0x3f   : > { %s706_s10 = scalar_lea.vmem %s940_s7, 128  ;;  %s796_s12 = smov [#allocation3]  }
  0x40   : > { %p707_p8 = scmp.ne.s32.totalorder %s940_s7, %s706_s10  ;;  %s711_s30 = sshll.u32 %s796_s12, 4  ;;  %s712_s30 = int_to_ptr.vmem [resolvable:$false] %s711_s30 }
  0x41   : > { %s713_s13 = scalar_lea.vmem %s712_s30, 256  ;;  %p714_p3 = scmp.lt.s32.totalorder %s940_s7, %s712_s30 }
  0x42   : > { %p709_p10 = pnand %p707_p8, %p693_p0  ;;  %p715_p7 = scmp.lt.s32.totalorder %s713_s13, %s706_s10 }
  0x44   : > { %p710_p13 = pneg %p709_p10  ;;  %p716_p9 = por %p715_p7, %p714_p3 }
  0x46   : > { %p717_p2 = pnand %p716_p9, %p710_p13 }
  0x48   : > { %720 = shalt.err (!%p717_p2)
}
  0x49   : > { %612 = dma.hbm_to_vmem [thread:$0]  (!%p936_p11), %s934_s14, 128, %s940_s7, %s200_s15  }
  0x4a   : > { %p1059_p5 = scmp.ne.s32.totalorder %s1054_s27, 0 }
  0x4b   : > { %s970_s29 = sand.u32 (!%p1059_p5), 1, %s783_s21   ;;  %p1060_p0 = scmp.ne.s32.totalorder (!%p1059_p5), %s1052_s25, 0 }
  0x4c   : > { %219 = sbr.rel (%p1059_p5) target bundleno = 503 (0x1f7), region = 40  ;;  %s556_s16 = sshll.u32 (!%p1059_p5), %s970_s29, 3 }
  0x4d   : > { %s222_s17 = scalar_lea.sflag (!%p1059_p5), [#allocation4], %s970_s29  ;;  %s976_s18 = scalar_lea.vmem (!%p1059_p5), [#allocation3], %s556_s16 }
  0x53   : > { %766 = dma.done.wait (%p1060_p0), %s222_s17, 128  }
  0x54   : > { %768 = vsyncadd (%p1060_p0), %s222_s17, 4294967168  ;;  %p1061_p11 = scmp.eq.s32.totalorder %s855_s4, 0 }
  0x56   : > { %770 = dma.done.wait (%p1061_p11), [#allocation7], 1536   ;;  %p1062_p1 = pmov %p1061_p11 }
  0x57   : > { %v797_v0 = vmov 0.0|0.0   ;;  %vm798_vm0 = vmmov 0   ;;  %v799_v1 = vmov 0.0   ;;  %v259_v2 = vld [vmem:[#allocation6 + $0x10] sm:$0xff]  ;;  %v262_v3 = vld [vmem:[#allocation6 + $0x28] sm:$0xff]  ;;  %v265_v4 = vld [vmem:[#allocation6 + $0x40] sm:$0xff]  ;;  %v271_v21 = vlaneseq }
  0x58   : > { %772 = vsyncadd (%p1062_p1), [#allocation7], 4294965760  ;;  %591 = vmatprep.subr.bf16.mxu1 %v797_v0  ;;  %580 = vmatprep.mubr.msk.f32.mxu1 %vm798_vm0, %v799_v1  ;;  %v592_v5 = vpack.c.bf16 %v262_v3, %v259_v2  ;;  %v268_v6 = vld [vmem:[#allocation6 + $0x58] sm:$0xff]  ;;  %v258_v7 = vld [vmem:[#allocation6 + $0x8] sm:$0xff]  ;;  %vm286_vm1 = vcmask 261120   ;;  %s442_s8 = sld [smem:[#allocation2]] }
  0x59   : > { %354 = vmatprep.mubr.f32.mxu0 %v799_v1  ;;  %v261_v8 = vld [vmem:[#allocation6 + $0x20] sm:$0xff]  ;;  %v260_v10 = vld [vmem:[#allocation6 + $0x18] sm:$0xff]  ;;  %v595_v11 = vpack.c.bf16 %v268_v6, %v265_v4  ;;  %v267_v15 = vld [vmem:[#allocation6 + $0x50] sm:$0xff]  ;;  %v272_v22 = vshrl.u32 %v271_v21, 7  ;;  %s564_s15 = sshll.u32 %s855_s4, 7  ;;  %s255_s19 = scalar_lea.vmem [#allocation8], %s556_s16 }
  0x5a   : > { %v257_v9 = vld [vmem:[#allocation6] sm:$0xff]  ;;  %593 = vmatpush3.bf16.msra.mxu1 %v592_v5  ;;  %v583_v12 = vpack.c.bf16 %v261_v8, %v258_v7  ;;  %v264_v14 = vld [vmem:[#allocation6 + $0x38] sm:$0xff]  ;;  %v263_v16 = vld [vmem:[#allocation6 + $0x30] sm:$0xff]  ;;  %s469_s24 = sshll.u32 %s255_s19, 4  ;;  %s999_s12 = scalar_lea.hbm %s1048_s5, %s564_s15  ;;  %s1001_s24 = int_to_ptr.vmem [resolvable:$true] %s469_s24 }
  0x5b   : > { %v585_v13 = vpack.c.bf16 %v260_v10, %v257_v9  ;;  %594 = vmatprep.subr.bf16.mxu1 %v797_v0  ;;  %v587_v17 = vpack.c.bf16 %v267_v15, %v264_v14  ;;  %v266_v18 = vld [vmem:[#allocation6 + $0x48] sm:$0xff]  ;;  %v256_v20 = vld [vmem:[%s976_s18] sm:$0xff]  ;;  %v281_v23 = vsub.s32 2, %v272_v22  ;;  %v273_v32 = vsub.s32 0, %v272_v22  ;;  %s456_s30 = scalar_lea.sflag [#allocation5], %s970_s29  ;;  %s721_s13 = scalar_lea.vmem %s1001_s24, 128 }
  0x5c   : > { %584 = vmatprep.subr.bf16.mxu0 %v583_v12  ;;  %v589_v19 = vpack.c.bf16 %v266_v18, %v263_v16  ;;  %v269_v24 = vld [vmem:[%s1045_s2] sm:$0x7]  ;;  %v277_v34 = vsub.s32 1, %v272_v22  ;;  %p722_p4 = scmp.ne.s32.totalorder %s1001_s24, %s721_s13  ;;  %s800_s4 = smov [#allocation8]  }
  0x5d   : > { %586 = vmatpush1.bf16.msra.mxu0 %v585_v13  ;;  %v282_v25 = vrot.slane %v269_v24, %v281_v23  ;;  %v561_v29 = vld [vmem:[%s1046_s3] ss:$0 sm:$0xff]  ;;  %v274_v36 = vrot.slane %v269_v24, %v273_v32  ;;  %s725_s16 = sshll.u32 %s800_s4, 4  ;;  %s726_s16 = int_to_ptr.vmem [resolvable:$false] %s725_s16 }
  0x5e   : > { %596 = vmatpush3.bf16.msra.mxu1 %v595_v11  ;;  %588 = vmatprep.subr.bf16.mxu0 %v587_v17  ;;  %v278_v37 = vrot.slane %v269_v24, %v277_v34  ;;  %v443_v41 = vstv %s442_s8  ;;  %p723_p6 = pnand %p722_p4, %p925_p12  ;;  %s727_s17 = scalar_lea.vmem %s726_s16, 256 }
  0x5f   : > { %p728_p10 = scmp.lt.s32.totalorder %s1001_s24, %s726_s16  ;;  %p729_p13 = scmp.lt.s32.totalorder %s727_s17, %s721_s13 }
  0x60   : > { %p724_p8 = pneg %p723_p6 }
  0x61   : > { %581 = vmatmul.mubr.msk.f32.vlgmr.msra.gmra.mrb[0].mxu1 %vm286_vm1, %v256_v20  ;;  %590 = vmatpush1.bf16.msra.mxu0 %v589_v19  ;;  %p730_p3 = por %p729_p13, %p728_p10 }
  0x63   : > { %p731_p7 = pnand %p730_p3, %p724_p8 }
  0x64   : > { %559 = vmatmul.mubr.msk.f32.vlgmr.msra.gmra.mrb[0].mxu0 %vm286_vm1, %v256_v20 }
 0x134   : > { %v427_v26 = vpop.f32.mrb[0].mxu1 }
 0x135   : > { %v428_v27 = vadd.f32 %v427_v26, %v282_v25  ;;  %v582_v28 = vpop.f32.mrb[1].mxu1 }
 0x137   : > { %v431_v30 = vmax.f32 %v428_v27, 0.0  ;;  %v356_v33 = vpop.f32.mrb[0].mxu0 }
 0x138   : > { %v358_v35 = vpop.f32.mrb[1].mxu0  ;;  %v357_v38 = vadd.f32 %v356_v33, %v274_v36 }
 0x139   : > { %v439_v31 = vmul.f32 %v561_v29, %v431_v30  ;;  %v359_v39 = vadd.f32 %v358_v35, %v278_v37 }
 0x13b   : > { %440 = vadd.xlane.f32.xlu0 %v439_v31  ;;  %v451_v40 = vsub.f32 %v357_v38, %v359_v39 }
 0x1c8   : > { %v441_v42 = vpop.xlane.xlu0 %440 }
 0x1c9   : > { %v444_v43 = vadd.f32 %v443_v41, %v441_v42 }
 0x1cb   : > { %v562_v44 = vmul.f32 -1.442695, %v444_v43 }
 0x1cd   : > { %659 = vpow2.f32 %v562_v44 }
 0x1d7   : > { %v660_v45 = vpop.eup %659 }
 0x1d8   : > { %v448_v46 = vadd.f32 1.0, %v660_v45 }
 0x1da   : > { %661 = vrcp.f32 %v448_v46 }
 0x1e4   : > { %v662_v47 = vpop.eup %661 }
 0x1e5   : > { %v452_v48 = vmul.f32 %v662_v47, %v451_v40 }
 0x1e7   : > { %v453_v49 = vadd.f32 %v452_v48, %v359_v39 }
 0x1e9   : > { %454 = vst [vmem:[%s255_s19] sm:$0xff] %v453_v49 }
 0x1ea   : > { %734 = shalt.err (!%p731_p7)
}
 0x1eb   : > { %s735_s29 = scalar_lea.hbm %s999_s12, 128  ;;  %s739_s27 = scalar_lea.hbm %s1048_s5, 256 }
 0x1ec   : > { %p736_p9 = scmp.ne.s32.totalorder %s999_s12, %s735_s29  ;;  %p740_p0 = scmp.lt.u32.totalorder %s999_s12, %s1048_s5 }
 0x1ed   : > { %p741_p11 = scmp.lt.u32.totalorder %s739_s27, %s735_s29  ;;  %p743_p4 = scmp.lt.u32.totalorder %s735_s29, %s999_s12 }
 0x1ee   : > { %p737_p2 = pnand %p736_p9, %p925_p12 }
 0x1ef   : > { %p742_p1 = por %p741_p11, %p740_p0 }
 0x1f0   : > { %p738_p5 = pneg %p737_p2 }
 0x1f1   : > { %p744_p6 = por %p743_p4, %p742_p1 }
 0x1f3   : > { %p745_p8 = pnand %p744_p6, %p738_p5 }
 0x1f5   : > { %748 = shalt.err (!%p745_p8)
}
 0x1f6   : > { %603 = dma.vmem_to_hbm [thread:$0]  (%p925_p12), %s1001_s24, 128, %s999_s12, %s456_s30  }
 0x1f7 PF: > { %s481_s8 = sand.u32 1, %s779_s20   ;;  %p1063_p10 = scmp.ne.s32.totalorder %s1053_s26, 0 }
 0x1f8   : > { %p1064_p13 = scmp.ge.s32.totalorder %s791_s23, 2  ;;  %s482_s15 = scalar_lea.sflag [#allocation5], %s481_s8 }
 0x1fa   : > { %p614_p3 = pnand %p1064_p13, %p1063_p10 }
 0x1fc   : > { %774 = dma.done.wait (!%p614_p3), %s482_s15, 128  }
 0x1fd   : > { %776 = vsyncadd (!%p614_p3), %s482_s15, 4294967168  ;;  %p20_p7 = scmp.ge.s32.totalorder %s890_s6, 4   ;;  %s1065_s20 = smov %s783_s21 }
 0x1fe   : > { %s1066_s21 = smov %s787_s22  ;;  %s1067_s22 = smov %s921_s28 }
 0x1ff   : > { %s1068_s23 = smov %s890_s6  ;;  %22 = sbr.rel (!%p20_p7) target bundleno = 8 (0x8), region = 89 }
 0x206   :  { %487 = vsyncpa [#allocation4], 1 }
 0x207   :  { %489 = vsyncpa [#allocation4 + $0x1], 1 }
 0x208   :  { %490 = vsyncpa [#allocation7], 1 }
 0x209   :  { %491 = vsyncpa [#allocation5], 1 }
 0x20a   :  { %493 = vsyncpa [#allocation5 + $0x1], 1 }

</bundles_post_ra>
